<compile_context>
chip_gen: v6e
topology: v6e:2x2x1
jax: 0.10.0
libtpu: 0.0.40
codegen_flags: <defaults>
</compile_context>

<pallas_src>
import jax
import jax.numpy as jnp
from jax.experimental import pallas as pl
from jax.experimental.pallas import tpu as pltpu


def mlp_kernel(x_ref, w1_ref, b1_ref, w2_ref, b2_ref, w3t_ref, b3_ref, o_ref):
    x = x_ref[...]                                   # (2, TB) batch on lanes

    # ---- layer1 (2 -> 16) + ReLU: MXU matmul, f32 accumulate ----
    h1 = jnp.dot(w1_ref[...], x,
                 preferred_element_type=jnp.float32,
                 precision=jax.lax.Precision.HIGHEST)          # (16, TB)
    h1 = jnp.maximum(h1 + b1_ref[...], 0.0)

    # ---- layer2 (16 -> 8) + Tanh: MXU matmul, tanh on the EUP ----
    h2 = jnp.dot(w2_ref[...], h1,
                 preferred_element_type=jnp.float32,
                 precision=jax.lax.Precision.HIGHEST)          # (8, TB)
    h2 = jnp.tanh(h2 + b2_ref[...])

    # ---- layer3 (8 -> 1): full-width multiply + sublane reduction (XLU) ----
    w3_col = w3t_ref[...]                            # (8, 1), lane-broadcast
    acc = jnp.sum(w3_col * h2, axis=0, keepdims=True)          # (1, TB)
    o_ref[...] = (acc + b3_ref[...]).astype(o_ref.dtype)       # lane-dense


def _round_up(n, m):
    return ((n + m - 1) // m) * m


def net_neur_forward(x, params, *, tb=None):
    """x: (B, 2) float32. params: PyTorch-layout weights (out,in), biases (out,1).

    Returns (B, 1) float32, identical to the nn.Module forward.
    """
    w1, b1 = params["w1"], params["b1"]      # (16, 2), (16, 1)
    w2, b2 = params["w2"], params["b2"]      # (8, 16), (8, 1)
    w3, b3 = params["w3"], params["b3"]      # (1, 8),  (1, 1)
    w3_t = w3.T                              # (8, 1): lane-broadcast form

    B = x.shape[0]
    if tb is None:
        # Aim for ~4 grid steps (pipelining / megacore), clamp to [128, 8192],
        # keep lane alignment.  Small B -> single 128-wide tiles; large B ->
        # 8192-wide tiles so the ~0.35 us/step overhead is fully amortized.
        tb = max(128, min(8192, _round_up(pl.cdiv(B, 4), 128)))
    assert tb % 128 == 0, "batch tile must be lane-aligned (multiple of 128)"

    num_tiles = pl.cdiv(B, tb)
    b_pad = num_tiles * tb

    x_t = x.T                                # (2, B): batch -> lanes
    if b_pad != B:
        # Padded tail columns are computed (all ops are total) then sliced away.
        x_t = jnp.pad(x_t, ((0, 0), (0, b_pad - B)))

    const = lambda shape: pl.BlockSpec(shape, lambda i: (0, 0))

    out_t = pl.pallas_call(
        mlp_kernel,
        out_shape=jax.ShapeDtypeStruct((1, b_pad), jnp.float32),
        grid=(num_tiles,),
        in_specs=[
            pl.BlockSpec((2, tb), lambda i: (0, i)),   # x tile, batch on lanes
            const(w1.shape), const(b1.shape),
            const(w2.shape), const(b2.shape),
            const(w3_t.shape), const(b3.shape),
        ],
        out_specs=pl.BlockSpec((1, tb), lambda i: (0, i)),  # lane-dense output
        compiler_params=pltpu.CompilerParams(
            dimension_semantics=("parallel",)),
    )(x_t, w1, b1, w2, b2, w3_t, b3)

    return out_t[:, :B].T                    # (B, 1)


def init_params(key):
    """Deterministic synthetic init matching nn.Linear shapes.

    Weights are PyTorch-native (out_features, in_features); biases are stored
    as (out_features, 1) so they broadcast along lanes in the transposed
    (feature-major) kernel layout.
    """
    k1, k2, k3, k4, k5, k6 = jax.random.split(key, 6)

    def uinit(k, shape, fan_in):
        bound = 1.0 / jnp.sqrt(fan_in)
        return jax.random.uniform(k, shape, jnp.float32, -bound, bound)

    return {
        "w1": uinit(k1, (16, 2), 2),   "b1": uinit(k2, (16, 1), 2),
        "w2": uinit(k3, (8, 16), 16),  "b2": uinit(k4, (8, 1), 16),
        "w3": uinit(k5, (1, 8), 8),    "b3": uinit(k6, (1, 1), 8),
    }


def reference_forward(x, params):
    """Pure-JAX reference matching PyTorch semantics (x: (B, 2))."""
    h1 = jnp.maximum(x @ params["w1"].T + params["b1"].T, 0.0)
    h2 = jnp.tanh(h1 @ params["w2"].T + params["b2"].T)
    return h2 @ params["w3"].T + params["b3"].T


if __name__ == "__main__":
    key = jax.random.PRNGKey(0)
    kx, kp = jax.random.split(key)

    B = 200          # not a multiple of the tile: exercises tail padding + 2 tiles
    x = jax.random.normal(kx, (B, 2), dtype=jnp.float32)
    params = init_params(kp)

    out = net_neur_forward(x, params)
    out = jax.block_until_ready(out)

    ref = reference_forward(x, params)
    assert out.shape == (B, 1), out.shape
    assert jnp.allclose(out, ref, atol=1e-5, rtol=1e-5), (out, ref)

    print("KERNEL_OK")
</pallas_src>

<mosaic_0001>
module attributes {stable_mosaic.version = 11 : i64} {
  func.func @mlp_kernel(%arg0: i32, %arg1: memref<2x128xf32, #tpu.memory_space<vmem>>, %arg2: memref<16x2xf32, #tpu.memory_space<vmem>>, %arg3: memref<16x1xf32, #tpu.memory_space<vmem>>, %arg4: memref<8x16xf32, #tpu.memory_space<vmem>>, %arg5: memref<8x1xf32, #tpu.memory_space<vmem>>, %arg6: memref<8x1xf32, #tpu.memory_space<vmem>>, %arg7: memref<1x1xf32, #tpu.memory_space<vmem>>, %arg8: memref<1x128xf32, #tpu.memory_space<vmem>>) attributes {dimension_semantics = [#tpu.dimension_semantics<parallel>], iteration_bounds = array<i64: 2>, scalar_prefetch = 0 : i64, scratch_operands = 0 : i64, tpu.core_type = #tpu.core_type<tc>, window_params = [{transform_indices = @transform_0, window_bounds = array<i64: 2, 128>}, {pipeline_mode = #tpu.pipeline_mode<synchronous>, transform_indices = @transform_1, window_bounds = array<i64: 16, 2>}, {pipeline_mode = #tpu.pipeline_mode<synchronous>, transform_indices = @transform_2, window_bounds = array<i64: 16, 1>}, {pipeline_mode = #tpu.pipeline_mode<synchronous>, transform_indices = @transform_3, window_bounds = array<i64: 8, 16>}, {pipeline_mode = #tpu.pipeline_mode<synchronous>, transform_indices = @transform_4, window_bounds = array<i64: 8, 1>}, {pipeline_mode = #tpu.pipeline_mode<synchronous>, transform_indices = @transform_5, window_bounds = array<i64: 8, 1>}, {pipeline_mode = #tpu.pipeline_mode<synchronous>, transform_indices = @transform_6, window_bounds = array<i64: 1, 1>}, {transform_indices = @transform_7, window_bounds = array<i64: 1, 128>}]} {
    %c0 = arith.constant 0 : index
    %c0_0 = arith.constant 0 : index
    %0 = vector.load %arg1[%c0, %c0_0] : memref<2x128xf32, #tpu.memory_space<vmem>>, vector<2x128xf32>
    %c0_1 = arith.constant 0 : index
    %c0_2 = arith.constant 0 : index
    %1 = vector.load %arg2[%c0_1, %c0_2] : memref<16x2xf32, #tpu.memory_space<vmem>>, vector<16x2xf32>
    %cst = arith.constant dense<0.000000e+00> : vector<16x128xf32>
    %2 = tpu.matmul %1, %0, %cst {dimension_numbers = #tpu.dot_dimension_numbers<[1], [0], [0], [1], [0, 0, 1, 1], [], []>, precision = #tpu.contract_precision<fp32>} : vector<16x2xf32>, vector<2x128xf32>, vector<16x128xf32> -> vector<16x128xf32>
    %c0_3 = arith.constant 0 : index
    %c0_4 = arith.constant 0 : index
    %3 = vector.load %arg3[%c0_3, %c0_4] : memref<16x1xf32, #tpu.memory_space<vmem>>, vector<16x1xf32>
    %4 = vector.broadcast %3 : vector<16x1xf32> to vector<16x128xf32>
    %5 = arith.addf %2, %4 : vector<16x128xf32>
    %cst_5 = arith.constant 0.000000e+00 : f32
    %6 = vector.broadcast %cst_5 : f32 to vector<16x128xf32>
    %7 = arith.maximumf %5, %6 : vector<16x128xf32>
    %c0_6 = arith.constant 0 : index
    %c0_7 = arith.constant 0 : index
    %8 = vector.load %arg4[%c0_6, %c0_7] : memref<8x16xf32, #tpu.memory_space<vmem>>, vector<8x16xf32>
    %cst_8 = arith.constant dense<0.000000e+00> : vector<8x128xf32>
    %9 = tpu.matmul %8, %7, %cst_8 {dimension_numbers = #tpu.dot_dimension_numbers<[1], [0], [0], [1], [0, 0, 1, 1], [], []>, precision = #tpu.contract_precision<fp32>} : vector<8x16xf32>, vector<16x128xf32>, vector<8x128xf32> -> vector<8x128xf32>
    %c0_9 = arith.constant 0 : index
    %c0_10 = arith.constant 0 : index
    %10 = vector.load %arg5[%c0_9, %c0_10] : memref<8x1xf32, #tpu.memory_space<vmem>>, vector<8x1xf32>
    %11 = vector.broadcast %10 : vector<8x1xf32> to vector<8x128xf32>
    %12 = arith.addf %9, %11 : vector<8x128xf32>
    %13 = math.tanh %12 : vector<8x128xf32>
    %c0_11 = arith.constant 0 : index
    %c0_12 = arith.constant 0 : index
    %14 = vector.load %arg6[%c0_11, %c0_12] : memref<8x1xf32, #tpu.memory_space<vmem>>, vector<8x1xf32>
    %15 = vector.broadcast %14 : vector<8x1xf32> to vector<8x128xf32>
    %16 = arith.mulf %15, %13 : vector<8x128xf32>
    %cst_13 = arith.constant dense<0.000000e+00> : vector<128xf32>
    %17 = vector.multi_reduction <add>, %16, %cst_13 [0] : vector<8x128xf32> to vector<128xf32>
    %18 = vector.shape_cast %17 : vector<128xf32> to vector<1x128xf32>
    %c0_14 = arith.constant 0 : index
    %c0_15 = arith.constant 0 : index
    %19 = vector.load %arg7[%c0_14, %c0_15] : memref<1x1xf32, #tpu.memory_space<vmem>>, vector<1x1xf32>
    %20 = vector.broadcast %19 : vector<1x1xf32> to vector<1x128xf32>
    %21 = arith.addf %18, %20 : vector<1x128xf32>
    %c0_16 = arith.constant 0 : index
    %c0_17 = arith.constant 0 : index
    %22 = vector.load %arg8[%c0_16, %c0_17] : memref<1x128xf32, #tpu.memory_space<vmem>>, vector<1x128xf32>
    tpu.vector_store %arg8[%c0_16, %c0_17], %21 {strides = array<i32>} : memref<1x128xf32, #tpu.memory_space<vmem>>, vector<1x128xf32>,
    return
  }
  func.func @transform_0(%arg0: i32) -> (i32, i32) {
    %c0_i32 = arith.constant 0 : i32
    %c0_i32_0 = arith.constant 0 : i32
    return %c0_i32, %arg0 : i32, i32
  }
  func.func @transform_1(%arg0: i32) -> (i32, i32) {
    %c0_i32 = arith.constant 0 : i32
    %c0_i32_0 = arith.constant 0 : i32
    %c0_i32_1 = arith.constant 0 : i32
    return %c0_i32, %c0_i32_0 : i32, i32
  }
  func.func @transform_2(%arg0: i32) -> (i32, i32) {
    %c0_i32 = arith.constant 0 : i32
    %c0_i32_0 = arith.constant 0 : i32
    %c0_i32_1 = arith.constant 0 : i32
    return %c0_i32, %c0_i32_0 : i32, i32
  }
  func.func @transform_3(%arg0: i32) -> (i32, i32) {
    %c0_i32 = arith.constant 0 : i32
    %c0_i32_0 = arith.constant 0 : i32
    %c0_i32_1 = arith.constant 0 : i32
    return %c0_i32, %c0_i32_0 : i32, i32
  }
  func.func @transform_4(%arg0: i32) -> (i32, i32) {
    %c0_i32 = arith.constant 0 : i32
    %c0_i32_0 = arith.constant 0 : i32
    %c0_i32_1 = arith.constant 0 : i32
    return %c0_i32, %c0_i32_0 : i32, i32
  }
  func.func @transform_5(%arg0: i32) -> (i32, i32) {
    %c0_i32 = arith.constant 0 : i32
    %c0_i32_0 = arith.constant 0 : i32
    %c0_i32_1 = arith.constant 0 : i32
    return %c0_i32, %c0_i32_0 : i32, i32
  }
  func.func @transform_6(%arg0: i32) -> (i32, i32) {
    %c0_i32 = arith.constant 0 : i32
    %c0_i32_0 = arith.constant 0 : i32
    %c0_i32_1 = arith.constant 0 : i32
    return %c0_i32, %c0_i32_0 : i32, i32
  }
  func.func @transform_7(%arg0: i32) -> (i32, i32) {
    %c0_i32 = arith.constant 0 : i32
    %c0_i32_0 = arith.constant 0 : i32
    return %c0_i32, %arg0 : i32, i32
  }
}

</mosaic_0001>

<bundles_post_ra>
// kernel: tpu_custom_call.1
= control target key start
LH: loop header
LB: loop body
LE: loop exit
PB: predicated region body
PF: predicated region fallthrough
CT: control target
= control target key end

     0   :  { %s1765_s0 = inlined_call_operand.vmem [shape: f32[2,256], index: 0, kind: input, shape index: {}]   ;;  %s1766_s1 = inlined_call_operand.vmem [shape: f32[16,2], index: 1, kind: input, shape index: {}]   ;;  %s1767_s2 = inlined_call_operand.vmem [shape: f32[16,1], index: 2, kind: input, shape index: {}]   ;;  %s1768_s3 = inlined_call_operand.vmem [shape: f32[8,16], index: 3, kind: input, shape index: {}]   ;;  %s1769_s4 = inlined_call_operand.vmem [shape: f32[8,1], index: 4, kind: input, shape index: {}]   ;;  %s1770_s5 = inlined_call_operand.vmem [shape: f32[8,1], index: 5, kind: input, shape index: {}]   ;;  %s1771_s6 = inlined_call_operand.<no memory space> [shape: f32[1,1], index: 6, kind: input, shape index: {}]   ;;  %s1772_s7 = inlined_call_operand.hbm [shape: f32[1,256], index: 7, kind: output, shape index: {}]  }
   0x1   :  { %v12_v0 = vstv %s1771_s6 }
   0x2   :  { %13 = vst [vmem:[#allocation2] sm:$0x1] %v12_v0 }
   0x3   :  { %14 = vsyncpa [#allocation4], 0 }
   0x4   :  { %16 = vsyncpa [#allocation4 + $0x1], 0  ;;  %s1627_s26 = smov 0   ;;  %s1629_s27 = smov 0  }
   0x5   :  { %s1631_s28 = smov 0   ;;  %s1633_s29 = smov 0  }
   0x6 LB: > { %s1648_s6 = sadd.s32 4294967295, %s1578_s29   ;;  %s1356_s30 = sadd.s32 4294967294, %s1578_s29   ;;  %s1578_s29 = sphi %s1633_s29, %s1778_s29   ;;  %s1574_s28 = sphi %s1631_s28, %s1777_s28   ;;  %s1570_s27 = sphi %s1629_s27, %s1776_s27   ;;  %s1566_s26 = sphi %s1627_s26, %s1775_s26  }
   0x7   : > { %s1652_s8 = sadd.s32 1, %s1578_s29   ;;  %s181_s9 = sadd.s32 1, %s1574_s28 }
   0x8   : > { %s178_s10 = ssub.s32 %s1578_s29, %s1652_s8  ;;  %p191_p0 = scmp.ne.s32.totalorder %s1574_s28, %s1570_s27 }
   0x9   : > { %p179_p1 = scmp.eq.s32.totalorder %s178_s10, 0  ;;  %p192_p2 = scmp.eq.s32.totalorder %s1648_s6, 1 }
   0xa   : > { %p197_p3 = scmp.ne.s32.totalorder %s1570_s27, %s1566_s26  ;;  %p198_p4 = scmp.eq.s32.totalorder %s1356_s30, 1 }
   0xb   : > { %s1663_s11 = scalar_select %p179_p1, %s1574_s28, %s181_s9  }
   0xc   : > { %p1665_p5 = por %p192_p2, %p191_p0  ;;  %p1669_p6 = por %p198_p4, %p197_p3 }
   0xd   : > { %p1359_p7 = scmp.ge.s32.totalorder %s1578_s29, 1  ;;  %p241_p8 = scmp.lt.s32.totalorder %s1578_s29, 3 }
   0xf   : > { %p242_p9 = pnand %p1359_p7, %p241_p8 }
  0x10   : > { %p271_p10 = scmp.lt.s32.totalorder (!%p242_p9), %s1648_s6, 1  ;;  %s269_s18 = sand.u32 (!%p242_p9), 1, %s1570_s27  }
  0x11   : > { %245 = sbr.rel (%p242_p9) target bundleno = 505 (0x1f9), region = 48  ;;  %s1361_s19 = sshll.u32 (!%p242_p9), %s1648_s6, 4 }
  0x12   : > { %s1299_s24 = scalar_lea.hbm (!%p242_p9), %s1772_s7, %s1361_s19  ;;  %s1289_s25 = scalar_lea.sflag (!%p242_p9), [#allocation4], %s269_s18 }
  0x13   : > { %s1583_s9 = smov (!%p242_p9), [#allocation3]  }
  0x14   : > { %s1522_s10 = sshll.u32 (!%p242_p9), %s1583_s9, 4  ;;  %s1523_s10 = int_to_ptr.vmem [resolvable:$false] %s1522_s10 }
  0x16   : > { %v276_v1 = vld [vmem:[%s1766_s1] sm:$0xff]  ;;  %v277_v2 = vld [vmem:[%s1766_s1 + $0x8] sm:$0xff]  ;;  %vm290_vm0 = vcmask 15360   ;;  %v1580_v5 = vmov 0   ;;  %s272_s20 = scalar_select %p271_p10, %s1648_s6, 1  ;;  %vm297_vm1 = vcmask 1041408  }
  0x17   : > { %v292_v3 = vsel %vm290_vm0, %v276_v1, 0  ;;  %v295_v4 = vsel %vm290_vm0, %v277_v2, 0  ;;  %1514 = vset.pattern.permute.xlu0 %v1580_v5  ;;  %v279_v6 = vld [vmem:[%s1767_s2 + $0x8] sm:$0xff]  ;;  %1515 = vset.pattern.permute.xlu1 %v1580_v5  ;;  %v278_v9 = vld [vmem:[%s1767_s2] sm:$0xff]  ;;  %v1581_v26 = vmov 0.0   ;;  %vm1582_vm2 = vmmov 0  }
  0x18   : > { %v367_v7 = vand.u32 4294901760, %v292_v3  ;;  %v377_v8 = vand.u32 4294901760, %v295_v4  ;;  %287 = vperm.xlu0 %1514, %v279_v6   ;;  %s1360_s23 = sshll.u32 %s272_s20, 1  ;;  %v1276_v16 = vld [vmem:[#allocation2] sm:$0x1]  ;;  %vm799_vm3 = vcmask 130048  }
  0x19   : > { %s274_s30 = scalar_lea.vmem %s1765_s0, %s1360_s23  ;;  %v793_v27 = vld [vmem:[%s1769_s4] sm:$0xff]  ;;  %s270_s20 = scalar_lea.vmem [#allocation3], %s269_s18 }
  0x1a   : > { %v368_v10 = vsub.f32 %v292_v3, %v367_v7  ;;  %v378_v11 = vsub.f32 %v295_v4, %v377_v8  ;;  %1407 = vmatprep.mubr.f32.mxu1 %v367_v7  ;;  %v275_v12 = vld [vmem:[%s274_s30] sm:$0x3]  ;;  %796 = vperm.xlu1 %1515, %v793_v27   ;;  %s1301_s21 = sshll.u32 %s270_s20, 4  ;;  %s1524_s6 = scalar_lea.vmem %s1523_s10, 32  ;;  %s1302_s21 = int_to_ptr.vmem [resolvable:$true] %s1301_s21 }
  0x1b   : > { %v299_v15 = vsel %vm297_vm1, %v275_v12, 0  ;;  %v1263_v28 = vld [vmem:[%s1770_s5] sm:$0xff]  ;;  %s1518_s30 = scalar_lea.vmem %s1302_s21, 16  ;;  %p1525_p0 = scmp.lt.s32.totalorder %s1302_s21, %s1523_s10 }
  0x1c   : > { %v369_v13 = vand.u32 4294901760, %v368_v10  ;;  %v379_v14 = vand.u32 4294901760, %v378_v11  ;;  %282 = vperm.xlu0 %1514, %v278_v9   ;;  %v332_v17 = vand.u32 4294901760, %v299_v15  ;;  %v792_v29 = vld [vmem:[%s1768_s3] sm:$0xff]  ;;  %p1519_p11 = scmp.ne.s32.totalorder %s1302_s21, %s1518_s30  ;;  %p1526_p1 = scmp.lt.s32.totalorder %s1524_s6, %s1518_s30 }
  0x1d   : > { %v801_v33 = vsel %vm799_vm3, %v792_v29, 0 }
  0x1e   : > { %v370_v18 = vsub.f32 %v368_v10, %v369_v13  ;;  %v380_v19 = vsub.f32 %v378_v11, %v379_v14  ;;  %1400 = vmatprep.subr.mxu0 %v332_v17  ;;  %v419_v22 = vsub.f32 %v299_v15, %v332_v17  ;;  %1266 = vperm.xlu1 %1515, %v1263_v28   ;;  %v1707_v35 = vand.u32 4294901760, %v801_v33  ;;  %p1520_p12 = pnand %p1519_p11, %p1665_p5  ;;  %p1527_p2 = por %p1526_p1, %p1525_p0 }
  0x1f   : > { %1401 = vmatpush3.msra.mxu0 %v332_v17 }
  0x20   : > { %v371_v20 = vand.u32 4294901760, %v370_v18  ;;  %v381_v21 = vand.u32 4294901760, %v380_v19  ;;  %1279 = vperm.xlu0 %1514, %v1276_v16   ;;  %v420_v23 = vand.u32 4294901760, %v419_v22  ;;  %1410 = vmatprep.subr.mxu0 %v419_v22  ;;  %v871_v43 = vsub.f32 %v801_v33, %v1707_v35  ;;  %p1521_p13 = pneg %p1520_p12 }
  0x22   : > { %1402 = vmatprep.mubr.f32.mxu0 %v371_v20  ;;  %v421_v24 = vsub.f32 %v419_v22, %v420_v23  ;;  %v872_v51 = vand.u32 4294901760, %v871_v43  ;;  %p1528_p3 = pnand %p1527_p2, %p1521_p13 }
  0x23   : > { %1403 = vmatmul.mubr.f32.vlgmr.msra.gmra.mxu0 %v381_v21 }
  0x24   : > { %1411 = vmatpush3.msra.mxu0 %v419_v22  ;;  %1412 = vmatprep.mubr.f32.mxu0 %v368_v10  ;;  %v422_v25 = vand.u32 4294901760, %v421_v24  ;;  %v873_v59 = vsub.f32 %v871_v43, %v872_v51 }
  0x25   : > { %1420 = vmatprep.subr.mxu0 %v420_v23 }
  0x26   : > { %1405 = vmatprep.subr.mxu1 %v422_v25  ;;  %v874_v0 = vand.u32 4294901760, %v873_v59 }
  0x27   : > { %1413 = vmatmul.mubr.f32.vlgmr.msra.gmra.mxu0 %v378_v11  ;;  %1406 = vmatpush3.msra.mxu1 %v422_v25 }
  0x28   : > { %1421 = vmatpush3.msra.mxu0 %v420_v23  ;;  %1422 = vmatprep.mubr.f32.mxu0 %v367_v7 }
  0x29   : > { %1408 = vmatmul.mubr.f32.vlgmr.msra.gmra.mxu1 %v377_v8  ;;  %1415 = vmatprep.subr.mxu1 %v332_v17 }
  0x2a   : > { %1416 = vmatpush3.msra.mxu1 %v332_v17  ;;  %1417 = vmatprep.mubr.f32.mxu1 %v369_v13 }
  0x2b   : > { %1423 = vmatmul.mubr.f32.vlgmr.msra.gmra.mxu0 %v377_v8  ;;  %1425 = vmatprep.subr.mxu1 %v332_v17 }
  0x2c   : > { %1430 = vmatprep.subr.mxu0 %v1581_v26  ;;  %1434 = vmatprep.mubr.msk.f32.mxu0 %vm1582_vm2, %v1581_v26 }
  0x2d   : > { %1418 = vmatmul.mubr.f32.vlgmr.msra.gmra.mxu1 %v379_v14 }
  0x2e   : > { %1426 = vmatpush3.msra.mxu1 %v332_v17  ;;  %1427 = vmatprep.mubr.f32.mxu1 %v367_v7 }
  0x2f   : > { %1437 = vmatprep.subr.mxu1 %v1581_v26 }
  0x31   : > { %1428 = vmatmul.mubr.f32.vlgmr.msra.gmra.mxu1 %v377_v8 }
  0x32   : > { %1441 = vmatprep.mubr.msk.f32.mxu1 %vm1582_vm2, %v1581_v26 }
  0x93   : > { %v288_v30 = vpop.permute.xlu0 %287 }
  0x95   : > { %v797_v12 = vpop.permute.xlu1 %796 }
  0x97   : > { %v283_v36 = vpop.permute.xlu0 %282 }
  0xe3   : > { %v1404_v31 = vpop.f32.mrf.mxu0 }
  0xe4   : > { %v384_v37 = vadd.f32 %v1404_v31, %v288_v30  ;;  %v1267_v30 = vpop.permute.xlu1 %1266  ;;  %v1282_v31 = vlaneseq }
  0xe5   : > { %v373_v32 = vpop.f32.mrf.mxu0 }
  0xe6   : > { %v374_v40 = vadd.f32 %v373_v32, %v283_v36 }
  0xe7   : > { %v1414_v34 = vpop.f32.mrf.mxu0 }
  0xe9   : > { %v1409_v38 = vpop.f32.mrf.mxu1  ;;  %v539_v39 = vpop.f32.mrf.mxu0 }
  0xea   : > { %v466_v41 = vadd.f32 %v1409_v38, %v384_v37 }
  0xeb   : > { %v459_v42 = vpop.f32.mrf.mxu1  ;;  %v1424_v47 = vpop.f32.mrf.mxu0 }
  0xec   : > { %v547_v44 = vadd.f32 %v1414_v34, %v466_v41  ;;  %v460_v45 = vadd.f32 %v459_v42, %v374_v40  ;;  %v1283_v34 = vshrl.u32 %v1282_v31, 7 }
  0xed   : > { %v1419_v46 = vpop.f32.mrf.mxu1  ;;  %v702_v54 = vpop.f32.mrf.mxu0 }
  0xee   : > { %v540_v48 = vadd.f32 %v539_v39, %v460_v45  ;;  %v629_v49 = vadd.f32 %v1419_v46, %v547_v44  ;;  %v1284_v37 = vsub.s32 0, %v1283_v34  ;;  %v1280_v39 = vpop.permute.xlu0 %1279 }
  0xef   : > { %v620_v50 = vpop.f32.mrf.mxu1 }
  0xf0   : > { %v709_v52 = vadd.f32 %v1424_v47, %v629_v49  ;;  %v621_v53 = vadd.f32 %v620_v50, %v540_v48  ;;  %v1285_v41 = vrot.slane %v1280_v39, %v1284_v37 }
  0xf1   : > { %v1429_v55 = vpop.f32.mrf.mxu1 }
  0xf2   : > { %v703_v56 = vadd.f32 %v702_v54, %v621_v53  ;;  %v787_v57 = vadd.f32 %v1429_v55, %v709_v52 }
  0xf3   : > { %v780_v58 = vpop.f32.mrf.mxu1 }
  0xf4   : > { %v791_v60 = vmax.f32 %v787_v57, 0.0  ;;  %v781_v61 = vadd.f32 %v780_v58, %v703_v56 }
  0xf6   : > { %v832_v62 = vand.u32 4294901760, %v791_v60  ;;  %v790_v63 = vmax.f32 %v781_v61, 0.0 }
  0xf8   : > { %v910_v1 = vsub.f32 %v791_v60, %v832_v62  ;;  %v835_v2 = vand.u32 4294901760, %v790_v63  ;;  %1431 = vmatpush3.msra.mxu0 %v832_v62 }
  0xf9   : > { %1432 = vmatprep.subr.mxu0 %v1581_v26 }
  0xfa   : > { %v911_v3 = vand.u32 4294901760, %v910_v1  ;;  %v917_v4 = vsub.f32 %v790_v63, %v835_v2  ;;  %1433 = vmatpush3.msra.mxu0 %v835_v2 }
  0xfb   : > { %1444 = vmatprep.subr.mxu0 %v1581_v26  ;;  %1435 = vmatmul.mubr.f32.vlgmr.msra.gmra.mxu0 %v874_v0 }
  0xfc   : > { %v912_v5 = vsub.f32 %v910_v1, %v911_v3  ;;  %v918_v6 = vand.u32 4294901760, %v917_v4  ;;  %1445 = vmatpush3.msra.mxu0 %v910_v1  ;;  %1448 = vmatprep.mubr.msk.f32.mxu0 %vm1582_vm2, %v1581_v26 }
  0xfd   : > { %1446 = vmatprep.subr.mxu0 %v1581_v26 }
  0xfe   : > { %v919_v7 = vsub.f32 %v917_v4, %v918_v6  ;;  %1447 = vmatpush3.msra.mxu0 %v917_v4  ;;  %v913_v8 = vand.u32 4294901760, %v912_v5 }
  0xff   : > { %1458 = vmatprep.subr.mxu0 %v1581_v26  ;;  %1449 = vmatmul.mubr.f32.vlgmr.msra.gmra.mxu0 %v871_v43 }
 0x100   : > { %1438 = vmatpush3.msra.mxu1 %v913_v8  ;;  %1459 = vmatpush3.msra.mxu0 %v911_v3  ;;  %v920_v9 = vand.u32 4294901760, %v919_v7 }
 0x101   : > { %1439 = vmatprep.subr.mxu1 %v1581_v26  ;;  %1460 = vmatprep.subr.mxu0 %v1581_v26 }
 0x102   : > { %1440 = vmatpush3.msra.mxu1 %v920_v9  ;;  %1461 = vmatpush3.msra.mxu0 %v918_v6 }
 0x103   : > { %1442 = vmatmul.mubr.f32.vlgmr.msra.gmra.mxu1 %v1707_v35  ;;  %1451 = vmatprep.subr.mxu1 %v1581_v26 }
 0x104   : > { %1452 = vmatpush3.msra.mxu1 %v832_v62  ;;  %1455 = vmatprep.mubr.msk.f32.mxu1 %vm1582_vm2, %v1581_v26 }
 0x105   : > { %1453 = vmatprep.subr.mxu1 %v1581_v26  ;;  %1462 = vmatprep.mubr.msk.f32.mxu0 %vm1582_vm2, %v1581_v26 }
 0x106   : > { %1454 = vmatpush3.msra.mxu1 %v835_v2  ;;  %1463 = vmatmul.mubr.f32.vlgmr.msra.gmra.mxu0 %v1707_v35 }
 0x107   : > { %1456 = vmatmul.mubr.f32.vlgmr.msra.gmra.mxu1 %v872_v51  ;;  %1465 = vmatprep.subr.mxu1 %v1581_v26 }
 0x108   : > { %1466 = vmatpush3.msra.mxu1 %v832_v62  ;;  %1469 = vmatprep.mubr.msk.f32.mxu1 %vm1582_vm2, %v1581_v26 }
 0x109   : > { %1467 = vmatprep.subr.mxu1 %v1581_v26 }
 0x10a   : > { %1468 = vmatpush3.msra.mxu1 %v835_v2 }
 0x10b   : > { %1470 = vmatmul.mubr.f32.vlgmr.msra.gmra.mxu1 %v1707_v35 }
 0x1bb   : > { %v876_v10 = vpop.f32.mrf.mxu0 }
 0x1bc   : > { %v877_v14 = vadd.f32 %v876_v10, %v797_v12 }
 0x1bd   : > { %v1436_v11 = vpop.f32.mrf.mxu0 }
 0x1bf   : > { %v1033_v13 = vpop.f32.mrf.mxu0 }
 0x1c1   : > { %v1450_v15 = vpop.f32.mrf.mxu0 }
 0x1c3   : > { %v957_v16 = vpop.f32.mrf.mxu1 }
 0x1c4   : > { %v958_v17 = vadd.f32 %v957_v16, %v877_v14 }
 0x1c5   : > { %v1443_v18 = vpop.f32.mrf.mxu1 }
 0x1c6   : > { %v1034_v19 = vadd.f32 %v1033_v13, %v958_v17  ;;  %v1185_v20 = vpop.f32.mrf.mxu0 }
 0x1c7   : > { %v1108_v21 = vpop.f32.mrf.mxu1 }
 0x1c8   : > { %v1109_v22 = vadd.f32 %v1108_v21, %v1034_v19  ;;  %v1464_v23 = vpop.f32.mrf.mxu0 }
 0x1c9   : > { %v1457_v24 = vpop.f32.mrf.mxu1 }
 0x1ca   : > { %v1186_v25 = vadd.f32 %v1185_v20, %v1109_v22 }
 0x1cb   : > { %v1258_v26 = vpop.f32.mrf.mxu1 }
 0x1cc   : > { %v1259_v27 = vadd.f32 %v1258_v26, %v1186_v25 }
 0x1cd   : > { %v1471_v28 = vpop.f32.mrf.mxu1 }
 0x1ce   : > { %1516 = vtanh.f32 %v1259_v27 }
 0x1db   : > { %v1517_v29 = vpop.eup %1516 }
 0x1dc   : > { %v1269_v32 = vmul.f32 %v1517_v29, %v1267_v30 }
 0x1de   : > { %v1270_v33 = vrot.slane %v1269_v32, 4 }
 0x1e0   : > { %v1271_v35 = vadd.f32 %v1270_v33, %v1269_v32 }
 0x1e2   : > { %v1272_v36 = vrot.slane %v1271_v35, 2 }
 0x1e4   : > { %v1273_v38 = vadd.f32 %v1272_v36, %v1271_v35 }
 0x1e6   : > { %v1274_v40 = vrot.slane %v1273_v38, 1 }
 0x1e8   : > { %v1275_v42 = vadd.f32 %v1274_v40, %v1273_v38 }
 0x1ea   : > { %v1286_v43 = vadd.f32 %v1285_v41, %v1275_v42 }
 0x1ec   : > { %1287 = vst [vmem:[%s270_s20] sm:$0x1] %v1286_v43 }
 0x1ed   : > { %1531 = shalt.err (!%p1528_p3)
}
 0x1ee   : > { %s1532_s14 = scalar_lea.hbm %s1299_s24, 16  ;;  %s1536_s17 = scalar_lea.hbm %s1772_s7, 32 }
 0x1ef   : > { %p1533_p4 = scmp.ne.s32.totalorder %s1299_s24, %s1532_s14  ;;  %p1537_p9 = scmp.lt.s32.totalorder %s1299_s24, %s1772_s7 }
 0x1f0   : > { %p1538_p10 = scmp.lt.s32.totalorder %s1536_s17, %s1532_s14 }
 0x1f1   : > { %p1534_p7 = pnand %p1533_p4, %p1665_p5 }
 0x1f2   : > { %p1539_p11 = por %p1538_p10, %p1537_p9 }
 0x1f3   : > { %p1535_p8 = pneg %p1534_p7 }
 0x1f5   : > { %p1540_p12 = pnand %p1539_p11, %p1535_p8 }
 0x1f7   : > { %1543 = shalt.err (!%p1540_p12)
}
 0x1f8   : > { %1472 = dma.vmem_to_hbm [thread:$0]  (%p1665_p5), %s1302_s21, 16, %s1299_s24, %s1289_s25  }
 0x1f9 PF: > { %p1478_p13 = scmp.ge.s32.totalorder %s1578_s29, 2  ;;  %s1313_s20 = sand.u32 1, %s1566_s26  }
 0x1fa   : > { %s1314_s22 = scalar_lea.sflag [#allocation4], %s1313_s20 }
 0x1fb   : > { %p1475_p0 = pnand %p1478_p13, %p1669_p6 }
 0x1fd   : > { %p1476_p1 = pneg %p1475_p0 }
 0x1ff   : > { %1561 = dma.done.wait (%p1476_p1), %s1314_s22, 16  }
 0x200   : > { %1563 = vsyncadd (%p1476_p1), %s1314_s22, 4294967280  ;;  %p19_p2 = scmp.ge.s32.totalorder %s1652_s8, 4   ;;  %s1775_s26 = smov %s1570_s27 }
 0x201   : > { %s1776_s27 = smov %s1574_s28  ;;  %s1777_s28 = smov %s1663_s11 }
 0x202   : > { %s1778_s29 = smov %s1652_s8  ;;  %21 = sbr.rel (!%p19_p2) target bundleno = 6 (0x6), region = 83 }
 0x207   :  { %1318 = vsyncpa [#allocation4], 1 }
 0x208   :  { %1320 = vsyncpa [#allocation4 + $0x1], 1 }

</bundles_post_ra>
